<compile_context>
chip_gen: v7x
topology: tpu7x:2x2x1
jax: 0.10.0
libtpu: 0.0.40
codegen_flags: <defaults>
</compile_context>

<pallas_src>
import jax
import jax.numpy as jnp
from jax.experimental import pallas as pl
from jax.experimental.pallas import tpu as pltpu

LN_EPS = 1e-5


def _ffn_kernel(x_ref, w1_ref, b1_ref, w2_ref, b2_ref, gamma_ref, beta_ref, o_ref):
    """Fused FFN + residual + LayerNorm over a (TILE_M, H) row tile."""
    x = x_ref[...]                                        # (TILE_M, H) f32

    # Hoist the small (1, N) row parameters once per tile.
    b1 = b1_ref[...].astype(jnp.float32)                  # (1, 2H)
    b2 = b2_ref[...].astype(jnp.float32)                  # (1, H)
    gamma = gamma_ref[...].astype(jnp.float32)            # (1, H)
    beta = beta_ref[...].astype(jnp.float32)              # (1, H)

    # Linear 1 + ReLU: bf16 operands, fp32 accumulation on the MXU.
    h = jnp.dot(x.astype(jnp.bfloat16), w1_ref[...],
                preferred_element_type=jnp.float32) + b1  # (TILE_M, 2H) f32
    h = jnp.maximum(h, 0.0)

    # Linear 2: bf16 operands, fp32 accumulation.
    y = jnp.dot(h.astype(jnp.bfloat16), w2_ref[...],
                preferred_element_type=jnp.float32) + b2  # (TILE_M, H) f32

    # Dropout (eval mode) is identity; residual connection in fp32.
    r = x + y

    # LayerNorm over the hidden (lane) axis, fp32 throughout (stable two-pass).
    mean = jnp.mean(r, axis=-1, keepdims=True)
    cent = r - mean
    var = jnp.mean(cent * cent, axis=-1, keepdims=True)
    norm = cent * jax.lax.rsqrt(var + LN_EPS)
    o_ref[...] = (norm * gamma + beta).astype(o_ref.dtype)


def _vmem_capacity_bytes():
    """Physical VMEM of the attached TPU; conservative 64 MiB (v7x per-TC) fallback."""
    try:
        return int(pltpu.get_tpu_info().vmem_capacity_bytes)
    except Exception:
        return 64 << 20


def _round_up(x, m):
    return ((x + m - 1) // m) * m


def feed_forward(x, w1, b1, w2, b2, gamma, beta, *, tile_m_pref=512):
    """x: (B, S, H) float32; w1: (H, 2H); w2: (2H, H). Returns (B, S, H)."""
    B, S, H = x.shape
    H2 = 2 * H
    M = B * S
    x2d = x.reshape(M, H)

    # Weights as bf16 MXU operands; cast only if the caller didn't already.
    w1_bf = w1 if w1.dtype == jnp.bfloat16 else w1.astype(jnp.bfloat16)
    w2_bf = w2 if w2.dtype == jnp.bfloat16 else w2.astype(jnp.bfloat16)
    b1r = b1.reshape(1, H2).astype(jnp.float32)
    b2r = b2.reshape(1, H).astype(jnp.float32)
    gammar = gamma.reshape(1, H).astype(jnp.float32)
    betar = beta.reshape(1, H).astype(jnp.float32)

    # ---- VMEM budgeting (per generation) -----------------------------------
    vmem_cap = _vmem_capacity_bytes()
    budget = int(0.85 * vmem_cap)

    # Resident footprint: single-buffered bf16 weights + small fp32 row params.
    resident = (w1_bf.size + w2_bf.size) * 2
    resident += (b1r.size + b2r.size + gammar.size + betar.size) * 4
    # Per-row activation bytes: x & out double-buffered fp32, fp32 h (2H),
    # bf16 casts of x and h, plus ~3 fp32-wide temporaries (residual / LN).
    per_row = (2 * 2 * H * 4) + (H2 * 4) + (H * 2 + H2 * 2) + (3 * H * 4)

    # Row tile: multiple of 16 (bf16 sublane packing), tight against M, shrunk
    # (not just the limit clamped) until resident + activations fit the budget.
    tile_m = min(int(tile_m_pref), _round_up(M, 16))
    tile_m = max(16, _round_up(pl.cdiv(M, pl.cdiv(M, tile_m)), 16))
    while resident + per_row * tile_m > budget and tile_m > 16:
        tile_m = max(16, _round_up(tile_m // 2, 16))

    n_tiles = pl.cdiv(M, tile_m)
    m_pad = n_tiles * tile_m
    if m_pad != M:
        # Zero rows are harmless: eps keeps LayerNorm finite; sliced off below.
        x2d = jnp.pad(x2d, ((0, m_pad - M), (0, 0)))

    vmem_limit = int(min(max(resident + per_row * tile_m + (4 << 20), 32 << 20),
                         int(0.95 * vmem_cap)))

    cost = pl.CostEstimate(
        flops=int(2 * m_pad * H * H2 * 2 + 10 * m_pad * H),
        transcendentals=int(m_pad),
        bytes_accessed=int(x2d.nbytes + m_pad * H * 4 + resident),
    )

    def _run(single_buffer_constants):
        if single_buffer_constants:
            # Constants never change across the grid -> single buffer suffices.
            const_kw = dict(pipeline_mode=pl.Buffered(1))
        else:
            const_kw = {}
        in_specs = [
            pl.BlockSpec((tile_m, H), lambda i: (i, 0)),              # x (streamed)
            pl.BlockSpec((H, H2), lambda i: (0, 0), **const_kw),      # W1 (resident)
            pl.BlockSpec((1, H2), lambda i: (0, 0), **const_kw),      # b1
            pl.BlockSpec((H2, H), lambda i: (0, 0), **const_kw),      # W2 (resident)
            pl.BlockSpec((1, H), lambda i: (0, 0), **const_kw),       # b2
            pl.BlockSpec((1, H), lambda i: (0, 0), **const_kw),       # gamma
            pl.BlockSpec((1, H), lambda i: (0, 0), **const_kw),       # beta
        ]
        out_specs = pl.BlockSpec((tile_m, H), lambda i: (i, 0))
        return pl.pallas_call(
            _ffn_kernel,
            out_shape=jax.ShapeDtypeStruct((m_pad, H), x.dtype),
            grid=(n_tiles,),
            in_specs=in_specs,
            out_specs=out_specs,
            compiler_params=pltpu.CompilerParams(
                dimension_semantics=("parallel",),
                vmem_limit_bytes=vmem_limit,
            ),
            cost_estimate=cost,
        )(x2d, w1_bf, b1r, w2_bf, b2r, gammar, betar)

    try:
        out2d = _run(True)
    except Exception:
        # pipeline_mode=pl.Buffered(1) not accepted by this jax/libtpu build;
        # fall back to default (double-buffered) specs so the kernel still runs.
        out2d = _run(False)

    return out2d[:M].reshape(B, S, H)


def _reference(x, w1, b1, w2, b2, gamma, beta):
    """Reference matching the kernel math (bf16 GEMM operands, fp32 accum/LN)."""
    B, S, H = x.shape
    x2 = x.reshape(-1, H)
    h = jnp.dot(x2.astype(jnp.bfloat16), w1.astype(jnp.bfloat16),
                preferred_element_type=jnp.float32) + b1
    h = jnp.maximum(h, 0.0)
    y = jnp.dot(h.astype(jnp.bfloat16), w2.astype(jnp.bfloat16),
                preferred_element_type=jnp.float32) + b2
    r = x2 + y
    mean = jnp.mean(r, axis=-1, keepdims=True)
    var = jnp.mean((r - mean) ** 2, axis=-1, keepdims=True)
    out = (r - mean) * jax.lax.rsqrt(var + LN_EPS) * gamma + beta
    return out.reshape(B, S, H)


def _reference_fp32(x, w1, b1, w2, b2, gamma, beta):
    h = jnp.maximum(x @ w1 + b1, 0.0)
    y = h @ w2 + b2
    r = x + y
    mean = jnp.mean(r, axis=-1, keepdims=True)
    var = jnp.mean((r - mean) ** 2, axis=-1, keepdims=True)
    return (r - mean) / jnp.sqrt(var + LN_EPS) * gamma + beta


if __name__ == "__main__":
    B, S, H = 2, 8, 32

    key = jax.random.PRNGKey(0)
    kx, k1, kb1, k2, kb2 = jax.random.split(key, 5)

    x = jax.random.normal(kx, (B, S, H), dtype=jnp.float32)

    # Deterministic parameter init (PyTorch nn.Linear-like uniform fan-in scale).
    lim1 = 1.0 / jnp.sqrt(H)
    w1 = jax.random.uniform(k1, (H, 2 * H), minval=-lim1, maxval=lim1, dtype=jnp.float32)
    b1 = jax.random.uniform(kb1, (2 * H,), minval=-lim1, maxval=lim1, dtype=jnp.float32)
    lim2 = 1.0 / jnp.sqrt(2 * H)
    w2 = jax.random.uniform(k2, (2 * H, H), minval=-lim2, maxval=lim2, dtype=jnp.float32)
    b2 = jax.random.uniform(kb2, (H,), minval=-lim2, maxval=lim2, dtype=jnp.float32)
    gamma = jnp.ones((H,), dtype=jnp.float32)
    beta = jnp.zeros((H,), dtype=jnp.float32)

    # Cast the weights to bf16 once, outside the hot path (no per-call recast).
    w1_bf = w1.astype(jnp.bfloat16)
    w2_bf = w2.astype(jnp.bfloat16)

    out = feed_forward(x, w1_bf, b1, w2_bf, b2, gamma, beta)
    out = jax.block_until_ready(out)
    assert out.shape == (B, S, H)

    # Check against a reference using the same mixed precision (tight), and a
    # pure-fp32 reference (loose, accounts for the bf16 MXU operands).
    ref_mixed = _reference(x, w1, b1, w2, b2, gamma, beta)
    assert jnp.allclose(out, ref_mixed, atol=2e-3, rtol=2e-3), "mismatch vs mixed-precision reference"
    ref_fp32 = _reference_fp32(x, w1, b1, w2, b2, gamma, beta)
    assert jnp.allclose(out, ref_fp32, atol=5e-2, rtol=5e-2), "mismatch vs fp32 reference"

    print("KERNEL_OK")
</pallas_src>

<mosaic_0001>
module attributes {stable_mosaic.version = 11 : i64} {
  func.func @_ffn_kernel(%arg0: i32, %arg1: memref<16x32xf32, #tpu.memory_space<vmem>>, %arg2: memref<32x64xbf16, #tpu.memory_space<vmem>>, %arg3: memref<1x64xf32, #tpu.memory_space<vmem>>, %arg4: memref<64x32xbf16, #tpu.memory_space<vmem>>, %arg5: memref<1x32xf32, #tpu.memory_space<vmem>>, %arg6: memref<1x32xf32, #tpu.memory_space<vmem>>, %arg7: memref<1x32xf32, #tpu.memory_space<vmem>>, %arg8: memref<16x32xf32, #tpu.memory_space<vmem>>) attributes {dimension_semantics = [#tpu.dimension_semantics<parallel>], iteration_bounds = array<i64: 1>, scalar_prefetch = 0 : i64, scratch_operands = 0 : i64, tpu.core_type = #tpu.core_type<tc>, window_params = [{transform_indices = @transform_0, window_bounds = array<i64: 16, 32>}, {pipeline_mode = #tpu.pipeline_mode<synchronous>, transform_indices = @transform_1, window_bounds = array<i64: 32, 64>}, {pipeline_mode = #tpu.pipeline_mode<synchronous>, transform_indices = @transform_2, window_bounds = array<i64: 1, 64>}, {pipeline_mode = #tpu.pipeline_mode<synchronous>, transform_indices = @transform_3, window_bounds = array<i64: 64, 32>}, {pipeline_mode = #tpu.pipeline_mode<synchronous>, transform_indices = @transform_4, window_bounds = array<i64: 1, 32>}, {pipeline_mode = #tpu.pipeline_mode<synchronous>, transform_indices = @transform_5, window_bounds = array<i64: 1, 32>}, {pipeline_mode = #tpu.pipeline_mode<synchronous>, transform_indices = @transform_6, window_bounds = array<i64: 1, 32>}, {transform_indices = @transform_7, window_bounds = array<i64: 16, 32>}]} {
    %c0 = arith.constant 0 : index
    %c0_0 = arith.constant 0 : index
    %0 = vector.load %arg1[%c0, %c0_0] : memref<16x32xf32, #tpu.memory_space<vmem>>, vector<16x32xf32>
    %c0_1 = arith.constant 0 : index
    %c0_2 = arith.constant 0 : index
    %1 = vector.load %arg3[%c0_1, %c0_2] : memref<1x64xf32, #tpu.memory_space<vmem>>, vector<1x64xf32>
    %c0_3 = arith.constant 0 : index
    %c0_4 = arith.constant 0 : index
    %2 = vector.load %arg5[%c0_3, %c0_4] : memref<1x32xf32, #tpu.memory_space<vmem>>, vector<1x32xf32>
    %c0_5 = arith.constant 0 : index
    %c0_6 = arith.constant 0 : index
    %3 = vector.load %arg6[%c0_5, %c0_6] : memref<1x32xf32, #tpu.memory_space<vmem>>, vector<1x32xf32>
    %c0_7 = arith.constant 0 : index
    %c0_8 = arith.constant 0 : index
    %4 = vector.load %arg7[%c0_7, %c0_8] : memref<1x32xf32, #tpu.memory_space<vmem>>, vector<1x32xf32>
    %5 = arith.truncf %0 : vector<16x32xf32> to vector<16x32xbf16>
    %c0_9 = arith.constant 0 : index
    %c0_10 = arith.constant 0 : index
    %6 = vector.load %arg2[%c0_9, %c0_10] : memref<32x64xbf16, #tpu.memory_space<vmem>>, vector<32x64xbf16>
    %cst = arith.constant dense<0.000000e+00> : vector<16x64xf32>
    %7 = tpu.matmul %5, %6, %cst {dimension_numbers = #tpu.dot_dimension_numbers<[1], [0], [0], [1], [0, 0, 1, 1], [], []>} : vector<16x32xbf16>, vector<32x64xbf16>, vector<16x64xf32> -> vector<16x64xf32>
    %8 = vector.broadcast %1 : vector<1x64xf32> to vector<16x64xf32>
    %9 = arith.addf %7, %8 : vector<16x64xf32>
    %cst_11 = arith.constant 0.000000e+00 : f32
    %10 = vector.broadcast %cst_11 : f32 to vector<16x64xf32>
    %11 = arith.maximumf %9, %10 : vector<16x64xf32>
    %12 = arith.truncf %11 : vector<16x64xf32> to vector<16x64xbf16>
    %c0_12 = arith.constant 0 : index
    %c0_13 = arith.constant 0 : index
    %13 = vector.load %arg4[%c0_12, %c0_13] : memref<64x32xbf16, #tpu.memory_space<vmem>>, vector<64x32xbf16>
    %cst_14 = arith.constant dense<0.000000e+00> : vector<16x32xf32>
    %14 = tpu.matmul %12, %13, %cst_14 {dimension_numbers = #tpu.dot_dimension_numbers<[1], [0], [0], [1], [0, 0, 1, 1], [], []>} : vector<16x64xbf16>, vector<64x32xbf16>, vector<16x32xf32> -> vector<16x32xf32>
    %15 = vector.broadcast %2 : vector<1x32xf32> to vector<16x32xf32>
    %16 = arith.addf %14, %15 : vector<16x32xf32>
    %17 = arith.addf %0, %16 : vector<16x32xf32>
    %cst_15 = arith.constant dense<0.000000e+00> : vector<16xf32>
    %18 = vector.multi_reduction <add>, %17, %cst_15 [1] : vector<16x32xf32> to vector<16xf32>
    %19 = vector.shape_cast %18 : vector<16xf32> to vector<16x1xf32>
    %cst_16 = arith.constant 3.200000e+01 : f32
    %20 = vector.broadcast %cst_16 : f32 to vector<16x1xf32>
    %21 = arith.divf %19, %20 : vector<16x1xf32>
    %22 = vector.broadcast %21 : vector<16x1xf32> to vector<16x32xf32>
    %23 = arith.subf %17, %22 : vector<16x32xf32>
    %24 = arith.mulf %23, %23 : vector<16x32xf32>
    %cst_17 = arith.constant dense<0.000000e+00> : vector<16xf32>
    %25 = vector.multi_reduction <add>, %24, %cst_17 [1] : vector<16x32xf32> to vector<16xf32>
    %26 = vector.shape_cast %25 : vector<16xf32> to vector<16x1xf32>
    %cst_18 = arith.constant 3.200000e+01 : f32
    %27 = vector.broadcast %cst_18 : f32 to vector<16x1xf32>
    %28 = arith.divf %26, %27 : vector<16x1xf32>
    %cst_19 = arith.constant 9.99999974E-6 : f32
    %29 = vector.broadcast %cst_19 : f32 to vector<16x1xf32>
    %30 = arith.addf %28, %29 : vector<16x1xf32>
    %31 = math.rsqrt %30 : vector<16x1xf32>
    %32 = vector.broadcast %31 : vector<16x1xf32> to vector<16x32xf32>
    %33 = arith.mulf %23, %32 : vector<16x32xf32>
    %34 = vector.broadcast %3 : vector<1x32xf32> to vector<16x32xf32>
    %35 = arith.mulf %33, %34 : vector<16x32xf32>
    %36 = vector.broadcast %4 : vector<1x32xf32> to vector<16x32xf32>
    %37 = arith.addf %35, %36 : vector<16x32xf32>
    %c0_20 = arith.constant 0 : index
    %c0_21 = arith.constant 0 : index
    %38 = vector.load %arg8[%c0_20, %c0_21] : memref<16x32xf32, #tpu.memory_space<vmem>>, vector<16x32xf32>
    tpu.vector_store %arg8[%c0_20, %c0_21], %37 {strides = array<i32>} : memref<16x32xf32, #tpu.memory_space<vmem>>, vector<16x32xf32>,
    return
  }
  func.func @transform_0(%arg0: i32) -> (i32, i32) {
    %c0_i32 = arith.constant 0 : i32
    %c0_i32_0 = arith.constant 0 : i32
    return %arg0, %c0_i32 : i32, i32
  }
  func.func @transform_1(%arg0: i32) -> (i32, i32) {
    %c0_i32 = arith.constant 0 : i32
    %c0_i32_0 = arith.constant 0 : i32
    %c0_i32_1 = arith.constant 0 : i32
    return %c0_i32, %c0_i32_0 : i32, i32
  }
  func.func @transform_2(%arg0: i32) -> (i32, i32) {
    %c0_i32 = arith.constant 0 : i32
    %c0_i32_0 = arith.constant 0 : i32
    %c0_i32_1 = arith.constant 0 : i32
    return %c0_i32, %c0_i32_0 : i32, i32
  }
  func.func @transform_3(%arg0: i32) -> (i32, i32) {
    %c0_i32 = arith.constant 0 : i32
    %c0_i32_0 = arith.constant 0 : i32
    %c0_i32_1 = arith.constant 0 : i32
    return %c0_i32, %c0_i32_0 : i32, i32
  }
  func.func @transform_4(%arg0: i32) -> (i32, i32) {
    %c0_i32 = arith.constant 0 : i32
    %c0_i32_0 = arith.constant 0 : i32
    %c0_i32_1 = arith.constant 0 : i32
    return %c0_i32, %c0_i32_0 : i32, i32
  }
  func.func @transform_5(%arg0: i32) -> (i32, i32) {
    %c0_i32 = arith.constant 0 : i32
    %c0_i32_0 = arith.constant 0 : i32
    %c0_i32_1 = arith.constant 0 : i32
    return %c0_i32, %c0_i32_0 : i32, i32
  }
  func.func @transform_6(%arg0: i32) -> (i32, i32) {
    %c0_i32 = arith.constant 0 : i32
    %c0_i32_0 = arith.constant 0 : i32
    %c0_i32_1 = arith.constant 0 : i32
    return %c0_i32, %c0_i32_0 : i32, i32
  }
  func.func @transform_7(%arg0: i32) -> (i32, i32) {
    %c0_i32 = arith.constant 0 : i32
    %c0_i32_0 = arith.constant 0 : i32
    return %arg0, %c0_i32 : i32, i32
  }
}

module attributes {stable_mosaic.version = 11 : i64} {
  func.func @_ffn_kernel(%arg0: i32, %arg1: memref<16x32xf32, #tpu.memory_space<vmem>>, %arg2: memref<32x64xbf16, #tpu.memory_space<vmem>>, %arg3: memref<1x64xf32, #tpu.memory_space<vmem>>, %arg4: memref<64x32xbf16, #tpu.memory_space<vmem>>, %arg5: memref<1x32xf32, #tpu.memory_space<vmem>>, %arg6: memref<1x32xf32, #tpu.memory_space<vmem>>, %arg7: memref<1x32xf32, #tpu.memory_space<vmem>>, %arg8: memref<16x32xf32, #tpu.memory_space<vmem>>) attributes {dimension_semantics = [#tpu.dimension_semantics<parallel>], iteration_bounds = array<i64: 1>, scalar_prefetch = 0 : i64, scratch_operands = 0 : i64, tpu.core_type = #tpu.core_type<tc>, window_params = [{transform_indices = @transform_0, window_bounds = array<i64: 16, 32>}, {pipeline_mode = #tpu.pipeline_mode<synchronous>, transform_indices = @transform_1, window_bounds = array<i64: 32, 64>}, {pipeline_mode = #tpu.pipeline_mode<synchronous>, transform_indices = @transform_2, window_bounds = array<i64: 1, 64>}, {pipeline_mode = #tpu.pipeline_mode<synchronous>, transform_indices = @transform_3, window_bounds = array<i64: 64, 32>}, {pipeline_mode = #tpu.pipeline_mode<synchronous>, transform_indices = @transform_4, window_bounds = array<i64: 1, 32>}, {pipeline_mode = #tpu.pipeline_mode<synchronous>, transform_indices = @transform_5, window_bounds = array<i64: 1, 32>}, {pipeline_mode = #tpu.pipeline_mode<synchronous>, transform_indices = @transform_6, window_bounds = array<i64: 1, 32>}, {transform_indices = @transform_7, window_bounds = array<i64: 16, 32>}]} {
    %c0 = arith.constant 0 : index
    %c0_0 = arith.constant 0 : index
    %0 = vector.load %arg1[%c0, %c0_0] : memref<16x32xf32, #tpu.memory_space<vmem>>, vector<16x32xf32>
    %c0_1 = arith.constant 0 : index
    %c0_2 = arith.constant 0 : index
    %1 = vector.load %arg3[%c0_1, %c0_2] : memref<1x64xf32, #tpu.memory_space<vmem>>, vector<1x64xf32>
    %c0_3 = arith.constant 0 : index
    %c0_4 = arith.constant 0 : index
    %2 = vector.load %arg5[%c0_3, %c0_4] : memref<1x32xf32, #tpu.memory_space<vmem>>, vector<1x32xf32>
    %c0_5 = arith.constant 0 : index
    %c0_6 = arith.constant 0 : index
    %3 = vector.load %arg6[%c0_5, %c0_6] : memref<1x32xf32, #tpu.memory_space<vmem>>, vector<1x32xf32>
    %c0_7 = arith.constant 0 : index
    %c0_8 = arith.constant 0 : index
    %4 = vector.load %arg7[%c0_7, %c0_8] : memref<1x32xf32, #tpu.memory_space<vmem>>, vector<1x32xf32>
    %5 = arith.truncf %0 : vector<16x32xf32> to vector<16x32xbf16>
    %c0_9 = arith.constant 0 : index
    %c0_10 = arith.constant 0 : index
    %6 = vector.load %arg2[%c0_9, %c0_10] : memref<32x64xbf16, #tpu.memory_space<vmem>>, vector<32x64xbf16>
    %cst = arith.constant dense<0.000000e+00> : vector<16x64xf32>
    %7 = tpu.matmul %5, %6, %cst {dimension_numbers = #tpu.dot_dimension_numbers<[1], [0], [0], [1], [0, 0, 1, 1], [], []>} : vector<16x32xbf16>, vector<32x64xbf16>, vector<16x64xf32> -> vector<16x64xf32>
    %8 = vector.broadcast %1 : vector<1x64xf32> to vector<16x64xf32>
    %9 = arith.addf %7, %8 : vector<16x64xf32>
    %cst_11 = arith.constant 0.000000e+00 : f32
    %10 = vector.broadcast %cst_11 : f32 to vector<16x64xf32>
    %11 = arith.maximumf %9, %10 : vector<16x64xf32>
    %12 = arith.truncf %11 : vector<16x64xf32> to vector<16x64xbf16>
    %c0_12 = arith.constant 0 : index
    %c0_13 = arith.constant 0 : index
    %13 = vector.load %arg4[%c0_12, %c0_13] : memref<64x32xbf16, #tpu.memory_space<vmem>>, vector<64x32xbf16>
    %cst_14 = arith.constant dense<0.000000e+00> : vector<16x32xf32>
    %14 = tpu.matmul %12, %13, %cst_14 {dimension_numbers = #tpu.dot_dimension_numbers<[1], [0], [0], [1], [0, 0, 1, 1], [], []>} : vector<16x64xbf16>, vector<64x32xbf16>, vector<16x32xf32> -> vector<16x32xf32>
    %15 = vector.broadcast %2 : vector<1x32xf32> to vector<16x32xf32>
    %16 = arith.addf %14, %15 : vector<16x32xf32>
    %17 = arith.addf %0, %16 : vector<16x32xf32>
    %cst_15 = arith.constant dense<0.000000e+00> : vector<16xf32>
    %18 = vector.multi_reduction <add>, %17, %cst_15 [1] : vector<16x32xf32> to vector<16xf32>
    %19 = vector.shape_cast %18 : vector<16xf32> to vector<16x1xf32>
    %cst_16 = arith.constant 3.200000e+01 : f32
    %20 = vector.broadcast %cst_16 : f32 to vector<16x1xf32>
    %21 = arith.divf %19, %20 : vector<16x1xf32>
    %22 = vector.broadcast %21 : vector<16x1xf32> to vector<16x32xf32>
    %23 = arith.subf %17, %22 : vector<16x32xf32>
    %24 = arith.mulf %23, %23 : vector<16x32xf32>
    %cst_17 = arith.constant dense<0.000000e+00> : vector<16xf32>
    %25 = vector.multi_reduction <add>, %24, %cst_17 [1] : vector<16x32xf32> to vector<16xf32>
    %26 = vector.shape_cast %25 : vector<16xf32> to vector<16x1xf32>
    %cst_18 = arith.constant 3.200000e+01 : f32
    %27 = vector.broadcast %cst_18 : f32 to vector<16x1xf32>
    %28 = arith.divf %26, %27 : vector<16x1xf32>
    %cst_19 = arith.constant 9.99999974E-6 : f32
    %29 = vector.broadcast %cst_19 : f32 to vector<16x1xf32>
    %30 = arith.addf %28, %29 : vector<16x1xf32>
    %31 = math.rsqrt %30 : vector<16x1xf32>
    %32 = vector.broadcast %31 : vector<16x1xf32> to vector<16x32xf32>
    %33 = arith.mulf %23, %32 : vector<16x32xf32>
    %34 = vector.broadcast %3 : vector<1x32xf32> to vector<16x32xf32>
    %35 = arith.mulf %33, %34 : vector<16x32xf32>
    %36 = vector.broadcast %4 : vector<1x32xf32> to vector<16x32xf32>
    %37 = arith.addf %35, %36 : vector<16x32xf32>
    %c0_20 = arith.constant 0 : index
    %c0_21 = arith.constant 0 : index
    %38 = vector.load %arg8[%c0_20, %c0_21] : memref<16x32xf32, #tpu.memory_space<vmem>>, vector<16x32xf32>
    tpu.vector_store %arg8[%c0_20, %c0_21], %37 {strides = array<i32>} : memref<16x32xf32, #tpu.memory_space<vmem>>, vector<16x32xf32>,
    return
  }
  func.func @transform_0(%arg0: i32) -> (i32, i32) {
    %c0_i32 = arith.constant 0 : i32
    %c0_i32_0 = arith.constant 0 : i32
    return %arg0, %c0_i32 : i32, i32
  }
  func.func @transform_1(%arg0: i32) -> (i32, i32) {
    %c0_i32 = arith.constant 0 : i32
    %c0_i32_0 = arith.constant 0 : i32
    %c0_i32_1 = arith.constant 0 : i32
    return %c0_i32, %c0_i32_0 : i32, i32
  }
  func.func @transform_2(%arg0: i32) -> (i32, i32) {
    %c0_i32 = arith.constant 0 : i32
    %c0_i32_0 = arith.constant 0 : i32
    %c0_i32_1 = arith.constant 0 : i32
    return %c0_i32, %c0_i32_0 : i32, i32
  }
  func.func @transform_3(%arg0: i32) -> (i32, i32) {
    %c0_i32 = arith.constant 0 : i32
    %c0_i32_0 = arith.constant 0 : i32
    %c0_i32_1 = arith.constant 0 : i32
    return %c0_i32, %c0_i32_0 : i32, i32
  }
  func.func @transform_4(%arg0: i32) -> (i32, i32) {
    %c0_i32 = arith.constant 0 : i32
    %c0_i32_0 = arith.constant 0 : i32
    %c0_i32_1 = arith.constant 0 : i32
    return %c0_i32, %c0_i32_0 : i32, i32
  }
  func.func @transform_5(%arg0: i32) -> (i32, i32) {
    %c0_i32 = arith.constant 0 : i32
    %c0_i32_0 = arith.constant 0 : i32
    %c0_i32_1 = arith.constant 0 : i32
    return %c0_i32, %c0_i32_0 : i32, i32
  }
  func.func @transform_6(%arg0: i32) -> (i32, i32) {
    %c0_i32 = arith.constant 0 : i32
    %c0_i32_0 = arith.constant 0 : i32
    %c0_i32_1 = arith.constant 0 : i32
    return %c0_i32, %c0_i32_0 : i32, i32
  }
  func.func @transform_7(%arg0: i32) -> (i32, i32) {
    %c0_i32 = arith.constant 0 : i32
    %c0_i32_0 = arith.constant 0 : i32
    return %arg0, %c0_i32 : i32, i32
  }
}

</mosaic_0001>

<bundles_post_ra>
// kernel: tpu_custom_call.1
= control target key start
LH: loop header
LB: loop body
LE: loop exit
PB: predicated region body
PF: predicated region fallthrough
CT: control target
= control target key end

     0   :  { %v330_v1 = vmov 0.0   ;;  %vm331_vm0 = vmmov 0   ;;  %vm57_vm1 = vcmask 261120   ;;  %s430_s0 = inlined_call_operand.vmem [shape: f32[16,32], index: 0, kind: input, shape index: {}]   ;;  %s431_s1 = inlined_call_operand.vmem [shape: bf16[32,64], index: 1, kind: input, shape index: {}]   ;;  %s432_s2 = inlined_call_operand.vmem [shape: f32[1,64], index: 2, kind: input, shape index: {}]   ;;  %s433_s3 = inlined_call_operand.vmem [shape: bf16[64,32], index: 3, kind: input, shape index: {}]   ;;  %s434_s4 = inlined_call_operand.vmem [shape: f32[1,32], index: 4, kind: input, shape index: {}]   ;;  %s435_s5 = inlined_call_operand.vmem [shape: f32[1,32], index: 5, kind: input, shape index: {}]   ;;  %s436_s6 = inlined_call_operand.vmem [shape: f32[1,32], index: 6, kind: input, shape index: {}]   ;;  %s437_s7 = inlined_call_operand.hbm [shape: f32[16,32], index: 7, kind: output, shape index: {}]  }
   0x1   :  { %v296_v0 = vld [vmem:[%s431_s1] sm:$0xff]   ;;  %271 = vmatprep.subr.bf16.mxu0 %v330_v1  ;;  %v297_v2 = vld [vmem:[%s431_s1 + $0x8] sm:$0xff]   ;;  %279 = vmatprep.subr.bf16.mxu1 %v330_v1 }
   0x2   :  { %272 = vmatpush3.bf16.msra.mxu0 %v296_v0  ;;  %275 = vmatprep.mubr.msk.bf16.mxu0 %vm331_vm0, %v330_v1  ;;  %v28_v3 = vld [vmem:[%s430_s0] sm:$0xff]  ;;  %v29_v4 = vld [vmem:[%s430_s0 + $0x8] sm:$0xff] }
   0x3   :  { %273 = vmatprep.subr.bf16.mxu0 %v330_v1  ;;  %v298_v5 = vld [vmem:[%s433_s3] sm:$0xff]   ;;  %287 = vmatprep.mubr.msk.bf16.mxu1 %vm331_vm0, %v330_v1  ;;  %v299_v6 = vld [vmem:[%s433_s3 + $0x8] sm:$0xff]   ;;  %v34_v7 = vpack.c.bf16 %v29_v4, %v28_v3 }
   0x4   :  { %280 = vmatpush3.bf16.msra.mxu1 %v298_v5 }
   0x5   :  { %281 = vmatprep.subr.bf16.mxu1 %v330_v1 }
   0x6   :  { %274 = vmatpush3.bf16.msra.mxu0 %v297_v2 }
   0x7   :  { %12 = vsyncpa [#allocation3], 0  ;;  %v300_v8 = vld [vmem:[%s433_s3 + $0x10] sm:$0xff]   ;;  %v301_v9 = vld [vmem:[%s433_s3 + $0x18] sm:$0xff]   ;;  %vm143_vm2 = vcmask 523264   ;;  %s332_s20 = smov [#allocation2]  }
   0x8   :  { %282 = vmatpush3.bf16.msra.mxu1 %v299_v6  ;;  %v251_v10 = vld [vmem:[%s432_s2] ss:$0 sm:$0xff]  ;;  %s240_s21 = sshll.u32 %s332_s20, 4  ;;  %s241_s21 = int_to_ptr.vmem [resolvable:$true] %s240_s21 }
   0x9   :  { %276 = vmatmul.mubr.msk.bf16.vlgmr.msra.gmra.mrb[0].mxu0 %vm57_vm1, %v34_v7  ;;  %283 = vmatprep.subr.bf16.mxu1 %v330_v1  ;;  %v255_v20 = vld [vmem:[%s434_s4] ss:$0 sm:$0xff]  ;;  %s306_s22 = scalar_lea.vmem %s241_s21, 256  ;;  %p311_p1 = scmp.lt.s32.totalorder %s241_s21, %s241_s21 }
   0xa   :  { %v261_v48 = vld [vmem:[%s435_s5] ss:$0 sm:$0xff]  ;;  %p307_p0 = scmp.ne.s32.totalorder %s241_s21, %s306_s22  ;;  %p312_p2 = scmp.lt.s32.totalorder %s306_s22, %s306_s22 }
   0xb   :  { %v262_v50 = vld [vmem:[%s436_s6] ss:$0 sm:$0xff] }
   0xc   :  { %284 = vmatpush3.bf16.msra.mxu1 %v300_v8  ;;  %p313_p3 = por %p312_p2, %p311_p1 }
   0xd   :  { %285 = vmatprep.subr.bf16.mxu1 %v330_v1 }
   0xe   :  { %p314_p4 = pnand %p313_p3, %p307_p0 }
  0x10   :  { %286 = vmatpush3.bf16.msra.mxu1 %v301_v9 }
  0xdc   :  { %v95_v11 = vpop.f32.mrb[0].mxu0 }
  0xdd   :  { %v96_v12 = vadd.f32 %v251_v10, %v95_v11  ;;  %v277_v13 = vpop.f32.mrb[1].mxu0 }
  0xde   :  { %v98_v14 = vpop.f32.mrb[2].mxu0 }
  0xdf   :  { %v99_v15 = vadd.f32 %v251_v10, %v98_v14  ;;  %v278_v16 = vpop.f32.mrb[3].mxu0  ;;  %v102_v17 = vmax.f32 %v96_v12, 0.0 }
  0xe1   :  { %v103_v18 = vmax.f32 %v99_v15, 0.0 }
  0xe3   :  { %v104_v19 = vpack.c.bf16 %v103_v18, %v102_v17 }
  0xe5   :  { %288 = vmatmul.mubr.msk.bf16.vlgmr.msra.gmra.mrb[0].mxu1 %vm143_vm2, %v104_v19 }
 0x1b8   :  { %v181_v21 = vpop.f32.mrb[0].mxu1 }
 0x1b9   :  { %v182_v22 = vadd.f32 %v255_v20, %v181_v21  ;;  %v289_v23 = vpop.f32.mrb[1].mxu1 }
 0x1ba   :  { %v184_v24 = vpop.f32.mrb[2].mxu1 }
 0x1bb   :  { %v185_v25 = vadd.f32 %v255_v20, %v184_v24  ;;  %v290_v26 = vpop.f32.mrb[3].mxu1  ;;  %v188_v27 = vadd.f32 %v182_v22, %v28_v3 }
 0x1bd   :  { %v190_v28 = vsel %vm57_vm1, %v188_v27, 0.0  ;;  %v189_v29 = vadd.f32 %v185_v25, %v29_v4 }
 0x1be   :  { %191 = vadd.xlane.f32.xlu0 %v190_v28 }
 0x1bf   :  { %v193_v30 = vsel %vm57_vm1, %v189_v29, 0.0 }
 0x1c2   :  { %194 = vadd.xlane.f32.xlu0 %v193_v30 }
 0x24b   :  { %v192_v31 = vpop.xlane.xlu0 %191 }
 0x24c   :  { %v197_v32 = vmul.f32 0.03125, %v192_v31 }
 0x24e   :  { %v199_v33 = vsub.f32 %v188_v27, %v197_v32 }
 0x24f   :  { %v195_v34 = vpop.xlane.xlu0 %194 }
 0x250   :  { %v198_v35 = vmul.f32 0.03125, %v195_v34  ;;  %v201_v36 = vmul.f32 %v199_v33, %v199_v33 }
 0x252   :  { %v200_v37 = vsub.f32 %v189_v29, %v198_v35  ;;  %v203_v38 = vsel %vm57_vm1, %v201_v36, 0.0 }
 0x253   :  { %204 = vadd.xlane.f32.xlu1 %v203_v38 }
 0x254   :  { %v202_v39 = vmul.f32 %v200_v37, %v200_v37 }
 0x256   :  { %v206_v40 = vsel %vm57_vm1, %v202_v39, 0.0 }
 0x257   :  { %207 = vadd.xlane.f32.xlu1 %v206_v40 }
 0x2e0   :  { %v205_v41 = vpop.xlane.xlu1 %204 }
 0x2e1   :  { %v209_v42 = vmul.f32 0.03125, %v205_v41 }
 0x2e3   :  { %v211_v43 = vadd.f32 1e-05, %v209_v42 }
 0x2e4   :  { %v208_v44 = vpop.xlane.xlu1 %207 }
 0x2e5   :  { %302 = vrsqrt.f32 %v211_v43  ;;  %v210_v45 = vmul.f32 0.03125, %v208_v44 }
 0x2e7   :  { %v212_v46 = vadd.f32 1e-05, %v210_v45 }
 0x2e9   :  { %304 = vrsqrt.f32 %v212_v46 }
 0x2ef   :  { %v303_v47 = vpop.eup %302 }
 0x2f0   :  { %v215_v49 = vmul.f32 %v303_v47, %v199_v33 }
 0x2f2   :  { %v223_v51 = vmul.f32 %v261_v48, %v215_v49 }
 0x2f3   :  { %v305_v52 = vpop.eup %304 }
 0x2f4   :  { %v216_v53 = vmul.f32 %v305_v52, %v200_v37  ;;  %v231_v54 = vadd.f32 %v262_v50, %v223_v51 }
 0x2f6   :  { %v224_v55 = vmul.f32 %v261_v48, %v216_v53  ;;  %233 = vst.msk [vmem:[#allocation2] sm:$0xff] %vm57_vm1, %v231_v54 }
 0x2f8   :  { %v232_v56 = vadd.f32 %v262_v50, %v224_v55 }
 0x2fa   :  { %234 = vst.msk [vmem:[#allocation2 + $0x8] sm:$0xff] %vm57_vm1, %v232_v56 }
 0x2fb   :  { %317 = shalt.err (!%p314_p4)
}
 0x2fc   :  { %s318_s23 = scalar_lea.hbm %s437_s7, 256 }
 0x2fd   :  { %p319_p5 = scmp.ne.s32.totalorder %s437_s7, %s318_s23  ;;  %p322_p6 = scmp.lt.u32.totalorder %s318_s23, %s437_s7 }
 0x2ff   :  { %p324_p7 = pnand %p322_p6, %p319_p5 }
 0x301   :  { %327 = shalt.err (!%p324_p7)
}
 0x302   :  { %s333_s28 = smov 128   ;;  %s334_s29 = smov 8  }
 0x303   :  { %246 = dma.vmem_to_hbm [thread:$0]  %s241_s21, 256, %s437_s7, [#allocation3], %s333_s28, %s333_s28, %s334_s29  }
 0x304   :  { %328 = dma.done.wait [#allocation3], 256  }
 0x305   :  { %329 = vsyncadd [#allocation3], 4294967040 }
 0x306   :  { %250 = vsyncpa [#allocation3], 1 }

// kernel: tpu_custom_call.1
= control target key start
LH: loop header
LB: loop body
LE: loop exit
PB: predicated region body
PF: predicated region fallthrough
CT: control target
= control target key end

     0   :  { %v330_v1 = vmov 0.0   ;;  %vm331_vm0 = vmmov 0   ;;  %vm57_vm1 = vcmask 261120   ;;  %s430_s0 = inlined_call_operand.vmem [shape: f32[16,32], index: 0, kind: input, shape index: {}]   ;;  %s431_s1 = inlined_call_operand.vmem [shape: bf16[32,64], index: 1, kind: input, shape index: {}]   ;;  %s432_s2 = inlined_call_operand.vmem [shape: f32[1,64], index: 2, kind: input, shape index: {}]   ;;  %s433_s3 = inlined_call_operand.vmem [shape: bf16[64,32], index: 3, kind: input, shape index: {}]   ;;  %s434_s4 = inlined_call_operand.vmem [shape: f32[1,32], index: 4, kind: input, shape index: {}]   ;;  %s435_s5 = inlined_call_operand.vmem [shape: f32[1,32], index: 5, kind: input, shape index: {}]   ;;  %s436_s6 = inlined_call_operand.vmem [shape: f32[1,32], index: 6, kind: input, shape index: {}]   ;;  %s437_s7 = inlined_call_operand.hbm [shape: f32[16,32], index: 7, kind: output, shape index: {}]  }
   0x1   :  { %v296_v0 = vld [vmem:[%s431_s1] sm:$0xff]   ;;  %271 = vmatprep.subr.bf16.mxu0 %v330_v1  ;;  %v297_v2 = vld [vmem:[%s431_s1 + $0x8] sm:$0xff]   ;;  %279 = vmatprep.subr.bf16.mxu1 %v330_v1 }
   0x2   :  { %272 = vmatpush3.bf16.msra.mxu0 %v296_v0  ;;  %275 = vmatprep.mubr.msk.bf16.mxu0 %vm331_vm0, %v330_v1  ;;  %v28_v3 = vld [vmem:[%s430_s0] sm:$0xff]  ;;  %v29_v4 = vld [vmem:[%s430_s0 + $0x8] sm:$0xff] }
   0x3   :  { %273 = vmatprep.subr.bf16.mxu0 %v330_v1  ;;  %v298_v5 = vld [vmem:[%s433_s3] sm:$0xff]   ;;  %287 = vmatprep.mubr.msk.bf16.mxu1 %vm331_vm0, %v330_v1  ;;  %v299_v6 = vld [vmem:[%s433_s3 + $0x8] sm:$0xff]   ;;  %v34_v7 = vpack.c.bf16 %v29_v4, %v28_v3 }
   0x4   :  { %280 = vmatpush3.bf16.msra.mxu1 %v298_v5 }
   0x5   :  { %281 = vmatprep.subr.bf16.mxu1 %v330_v1 }
   0x6   :  { %274 = vmatpush3.bf16.msra.mxu0 %v297_v2 }
   0x7   :  { %12 = vsyncpa [#allocation3], 0  ;;  %v300_v8 = vld [vmem:[%s433_s3 + $0x10] sm:$0xff]   ;;  %v301_v9 = vld [vmem:[%s433_s3 + $0x18] sm:$0xff]   ;;  %vm143_vm2 = vcmask 523264   ;;  %s332_s20 = smov [#allocation2]  }
   0x8   :  { %282 = vmatpush3.bf16.msra.mxu1 %v299_v6  ;;  %v251_v10 = vld [vmem:[%s432_s2] ss:$0 sm:$0xff]  ;;  %s240_s21 = sshll.u32 %s332_s20, 4  ;;  %s241_s21 = int_to_ptr.vmem [resolvable:$true] %s240_s21 }
   0x9   :  { %276 = vmatmul.mubr.msk.bf16.vlgmr.msra.gmra.mrb[0].mxu0 %vm57_vm1, %v34_v7  ;;  %283 = vmatprep.subr.bf16.mxu1 %v330_v1  ;;  %v255_v20 = vld [vmem:[%s434_s4] ss:$0 sm:$0xff]  ;;  %s306_s22 = scalar_lea.vmem %s241_s21, 256  ;;  %p311_p1 = scmp.lt.s32.totalorder %s241_s21, %s241_s21 }
   0xa   :  { %v261_v48 = vld [vmem:[%s435_s5] ss:$0 sm:$0xff]  ;;  %p307_p0 = scmp.ne.s32.totalorder %s241_s21, %s306_s22  ;;  %p312_p2 = scmp.lt.s32.totalorder %s306_s22, %s306_s22 }
   0xb   :  { %v262_v50 = vld [vmem:[%s436_s6] ss:$0 sm:$0xff] }
   0xc   :  { %284 = vmatpush3.bf16.msra.mxu1 %v300_v8  ;;  %p313_p3 = por %p312_p2, %p311_p1 }
   0xd   :  { %285 = vmatprep.subr.bf16.mxu1 %v330_v1 }
   0xe   :  { %p314_p4 = pnand %p313_p3, %p307_p0 }
  0x10   :  { %286 = vmatpush3.bf16.msra.mxu1 %v301_v9 }
  0xdc   :  { %v95_v11 = vpop.f32.mrb[0].mxu0 }
  0xdd   :  { %v96_v12 = vadd.f32 %v251_v10, %v95_v11  ;;  %v277_v13 = vpop.f32.mrb[1].mxu0 }
  0xde   :  { %v98_v14 = vpop.f32.mrb[2].mxu0 }
  0xdf   :  { %v99_v15 = vadd.f32 %v251_v10, %v98_v14  ;;  %v278_v16 = vpop.f32.mrb[3].mxu0  ;;  %v102_v17 = vmax.f32 %v96_v12, 0.0 }
  0xe1   :  { %v103_v18 = vmax.f32 %v99_v15, 0.0 }
  0xe3   :  { %v104_v19 = vpack.c.bf16 %v103_v18, %v102_v17 }
  0xe5   :  { %288 = vmatmul.mubr.msk.bf16.vlgmr.msra.gmra.mrb[0].mxu1 %vm143_vm2, %v104_v19 }
 0x1b8   :  { %v181_v21 = vpop.f32.mrb[0].mxu1 }
 0x1b9   :  { %v182_v22 = vadd.f32 %v255_v20, %v181_v21  ;;  %v289_v23 = vpop.f32.mrb[1].mxu1 }
 0x1ba   :  { %v184_v24 = vpop.f32.mrb[2].mxu1 }
 0x1bb   :  { %v185_v25 = vadd.f32 %v255_v20, %v184_v24  ;;  %v290_v26 = vpop.f32.mrb[3].mxu1  ;;  %v188_v27 = vadd.f32 %v182_v22, %v28_v3 }
 0x1bd   :  { %v190_v28 = vsel %vm57_vm1, %v188_v27, 0.0  ;;  %v189_v29 = vadd.f32 %v185_v25, %v29_v4 }
 0x1be   :  { %191 = vadd.xlane.f32.xlu0 %v190_v28 }
 0x1bf   :  { %v193_v30 = vsel %vm57_vm1, %v189_v29, 0.0 }
 0x1c2   :  { %194 = vadd.xlane.f32.xlu0 %v193_v30 }
 0x24b   :  { %v192_v31 = vpop.xlane.xlu0 %191 }
 0x24c   :  { %v197_v32 = vmul.f32 0.03125, %v192_v31 }
 0x24e   :  { %v199_v33 = vsub.f32 %v188_v27, %v197_v32 }
 0x24f   :  { %v195_v34 = vpop.xlane.xlu0 %194 }
 0x250   :  { %v198_v35 = vmul.f32 0.03125, %v195_v34  ;;  %v201_v36 = vmul.f32 %v199_v33, %v199_v33 }
 0x252   :  { %v200_v37 = vsub.f32 %v189_v29, %v198_v35  ;;  %v203_v38 = vsel %vm57_vm1, %v201_v36, 0.0 }
 0x253   :  { %204 = vadd.xlane.f32.xlu1 %v203_v38 }
 0x254   :  { %v202_v39 = vmul.f32 %v200_v37, %v200_v37 }
 0x256   :  { %v206_v40 = vsel %vm57_vm1, %v202_v39, 0.0 }
 0x257   :  { %207 = vadd.xlane.f32.xlu1 %v206_v40 }
 0x2e0   :  { %v205_v41 = vpop.xlane.xlu1 %204 }
 0x2e1   :  { %v209_v42 = vmul.f32 0.03125, %v205_v41 }
 0x2e3   :  { %v211_v43 = vadd.f32 1e-05, %v209_v42 }
 0x2e4   :  { %v208_v44 = vpop.xlane.xlu1 %207 }
 0x2e5   :  { %302 = vrsqrt.f32 %v211_v43  ;;  %v210_v45 = vmul.f32 0.03125, %v208_v44 }
 0x2e7   :  { %v212_v46 = vadd.f32 1e-05, %v210_v45 }
 0x2e9   :  { %304 = vrsqrt.f32 %v212_v46 }
 0x2ef   :  { %v303_v47 = vpop.eup %302 }
 0x2f0   :  { %v215_v49 = vmul.f32 %v303_v47, %v199_v33 }
 0x2f2   :  { %v223_v51 = vmul.f32 %v261_v48, %v215_v49 }
 0x2f3   :  { %v305_v52 = vpop.eup %304 }
 0x2f4   :  { %v216_v53 = vmul.f32 %v305_v52, %v200_v37  ;;  %v231_v54 = vadd.f32 %v262_v50, %v223_v51 }
 0x2f6   :  { %v224_v55 = vmul.f32 %v261_v48, %v216_v53  ;;  %233 = vst.msk [vmem:[#allocation2] sm:$0xff] %vm57_vm1, %v231_v54 }
 0x2f8   :  { %v232_v56 = vadd.f32 %v262_v50, %v224_v55 }
 0x2fa   :  { %234 = vst.msk [vmem:[#allocation2 + $0x8] sm:$0xff] %vm57_vm1, %v232_v56 }
 0x2fb   :  { %317 = shalt.err (!%p314_p4)
}
 0x2fc   :  { %s318_s23 = scalar_lea.hbm %s437_s7, 256 }
 0x2fd   :  { %p319_p5 = scmp.ne.s32.totalorder %s437_s7, %s318_s23  ;;  %p322_p6 = scmp.lt.u32.totalorder %s318_s23, %s437_s7 }
 0x2ff   :  { %p324_p7 = pnand %p322_p6, %p319_p5 }
 0x301   :  { %327 = shalt.err (!%p324_p7)
}
 0x302   :  { %s333_s28 = smov 128   ;;  %s334_s29 = smov 8  }
 0x303   :  { %246 = dma.vmem_to_hbm [thread:$0]  %s241_s21, 256, %s437_s7, [#allocation3], %s333_s28, %s333_s28, %s334_s29  }
 0x304   :  { %328 = dma.done.wait [#allocation3], 256  }
 0x305   :  { %329 = vsyncadd [#allocation3], 4294967040 }
 0x306   :  { %250 = vsyncpa [#allocation3], 1 }

</bundles_post_ra>
